<compile_context>
chip_gen: v5e
topology: v5e:2x2
jax: 0.10.0
libtpu: 0.0.40
codegen_flags: <defaults>
</compile_context>

<pallas_src>
import functools

import jax
import jax.numpy as jnp
from jax.experimental import pallas as pl
from jax.experimental.pallas import tpu as pltpu


def _round_up(x, m):
    return (x + m - 1) // m * m


def _sigmoid(x):
    # exp on the EUP, divide as approx reciprocal on the EUP -> frees VPU slots.
    return pl.reciprocal(1.0 + jnp.exp(-x), approx=True)


def _lstm_block_kernel(xh_ref, c_ref, w_ref, b_ref, mask_ref,
                       y_ref, h_out_ref, c_out_ref, acc_ref, *, hp):
    """Fused-single-matmul LSTMCell step + locked-dropout multiply."""
    k = pl.program_id(1)

    @pl.when(k == 0)
    def _():
        acc_ref[...] = jnp.zeros_like(acc_ref)

    # One bf16 MXU matmul per (batch tile, K tile): [Bt, Tk] @ [Tk, 4*Hp] -> f32.
    acc_ref[...] += jnp.dot(xh_ref[...], w_ref[...],
                            preferred_element_type=jnp.float32)

    @pl.when(k == pl.num_programs(1) - 1)
    def _():
        gates = acc_ref[...] + b_ref[...]                  # [Bt, 4*Hp], f32
        # Gate slices start on 128-lane boundaries (hp is a multiple of 128).
        i_g = _sigmoid(gates[:, 0 * hp:1 * hp])
        f_g = _sigmoid(gates[:, 1 * hp:2 * hp])
        g_g = jnp.tanh(gates[:, 2 * hp:3 * hp])
        o_g = _sigmoid(gates[:, 3 * hp:4 * hp])

        c = c_ref[...].astype(jnp.float32)
        c_new = f_g * c + i_g * g_g
        h_new = o_g * jnp.tanh(c_new)

        # LockedDropout mask (already scaled by 1/(1-p)) applied to y only.
        y_ref[...] = (h_new * mask_ref[...]).astype(y_ref.dtype)
        h_out_ref[...] = h_new.astype(h_out_ref.dtype)
        c_out_ref[...] = c_new.astype(c_out_ref.dtype)


def pack_lstm_params(weight_ih, weight_hh, bias_ih, bias_hh):
    """One-time packing: fused bf16 weight [Kp, 4*Hp] (gate blocks 128-aligned),
    fused f32 bias [1, 4*Hp]. Done once, NOT per step."""
    four_h, E = weight_ih.shape
    H = four_h // 4
    assert weight_hh.shape == (4 * H, H)

    Hp = _round_up(H, 128)                 # per-gate lane-aligned width
    K = E + Hp                             # fused contraction dim (x cols + padded h cols)
    Tk = min(_round_up(K, 128), 512)       # K tile (bounds weight-tile VMEM to <= ~4 MiB)
    Kp = _round_up(K, Tk)

    wih_t = weight_ih.T.astype(jnp.float32)    # [E, 4H]
    whh_t = weight_hh.T.astype(jnp.float32)    # [H, 4H]
    bsum = (bias_ih + bias_hh).astype(jnp.float32)

    w = jnp.zeros((Kp, 4 * Hp), jnp.float32)
    b = jnp.zeros((1, 4 * Hp), jnp.float32)
    for g in range(4):                         # gate order i, f, g, o
        w = w.at[:E, g * Hp:g * Hp + H].set(wih_t[:, g * H:(g + 1) * H])
        w = w.at[E:E + H, g * Hp:g * Hp + H].set(whh_t[:, g * H:(g + 1) * H])
        b = b.at[0, g * Hp:g * Hp + H].set(bsum[g * H:(g + 1) * H])

    return {"w": w.astype(jnp.bfloat16), "b": b,
            "E": E, "H": H, "Hp": Hp, "Kp": Kp, "Tk": Tk}


def lstm_block_forward(x, h, c, params, mask):
    """x:[B,E]  h,c,mask:[B,H]  params from pack_lstm_params.  Returns (y, h_new, c_new)."""
    B, E = x.shape
    H, Hp, Kp, Tk = params["H"], params["Hp"], params["Kp"], params["Tk"]
    assert E == params["E"] and h.shape == (B, H) and c.shape == (B, H)

    # Batch tiling (sublane-aligned); "parallel" axis -> shards across TCs (v7x).
    Bp = _round_up(max(B, 8), 8)
    Bt = min(Bp, 256)
    Bp = _round_up(Bp, Bt)

    # Fused [x, h] input in bf16 for the MXU (zero-padded: pads contribute 0).
    xh = jnp.zeros((Bp, Kp), jnp.float32)
    xh = xh.at[:B, :E].set(x.astype(jnp.float32))
    xh = xh.at[:B, E:E + H].set(h.astype(jnp.float32))
    xh = xh.astype(jnp.bfloat16)

    c_p = jnp.zeros((Bp, Hp), jnp.float32).at[:B, :H].set(c.astype(jnp.float32))
    mask_p = jnp.zeros((Bp, Hp), jnp.float32).at[:B, :H].set(mask.astype(jnp.float32))

    grid = (Bp // Bt, Kp // Tk)
    kernel = functools.partial(_lstm_block_kernel, hp=Hp)
    out_block = pl.BlockSpec((Bt, Hp), lambda b, k: (b, 0))

    y, h_new, c_new = pl.pallas_call(
        kernel,
        out_shape=(
            jax.ShapeDtypeStruct((Bp, Hp), x.dtype),
            jax.ShapeDtypeStruct((Bp, Hp), x.dtype),
            jax.ShapeDtypeStruct((Bp, Hp), x.dtype),
        ),
        grid_spec=pltpu.PrefetchScalarGridSpec(
            num_scalar_prefetch=0,
            grid=grid,
            in_specs=[
                pl.BlockSpec((Bt, Tk), lambda b, k: (b, k)),      # fused [x, h] (bf16)
                pl.BlockSpec((Bt, Hp), lambda b, k: (b, 0)),      # c (f32)
                pl.BlockSpec((Tk, 4 * Hp), lambda b, k: (k, 0)),  # fused weight (bf16)
                pl.BlockSpec((1, 4 * Hp), lambda b, k: (0, 0)),   # fused bias (f32)
                pl.BlockSpec((Bt, Hp), lambda b, k: (b, 0)),      # locked dropout mask
            ],
            out_specs=(out_block, out_block, out_block),
            scratch_shapes=[pltpu.VMEM((Bt, 4 * Hp), jnp.float32)],   # gate accumulator
        ),
        compiler_params=pltpu.CompilerParams(
            dimension_semantics=("parallel", "arbitrary"),
        ),
    )(xh, c_p, params["w"], params["b"], mask_p)

    return y[:B, :H], h_new[:B, :H], c_new[:B, :H]


def reference_forward(x, h, c, weight_ih, weight_hh, bias_ih, bias_hh, mask):
    gates = x @ weight_ih.T + h @ weight_hh.T + bias_ih + bias_hh
    H = h.shape[1]
    i_g = jax.nn.sigmoid(gates[:, 0 * H:1 * H])
    f_g = jax.nn.sigmoid(gates[:, 1 * H:2 * H])
    g_g = jnp.tanh(gates[:, 2 * H:3 * H])
    o_g = jax.nn.sigmoid(gates[:, 3 * H:4 * H])
    c_new = f_g * c + i_g * g_g
    h_new = o_g * jnp.tanh(c_new)
    return h_new * mask, h_new, c_new


if __name__ == "__main__":
    # Small shapes consistent with LSTMBlock(in_size, out_size): a [B, E] cell input.
    B, E, H = 2, 32, 32
    dropout = 0.0        # module default; LockedDropout mask is all ones -> identity
    train = True

    key = jax.random.PRNGKey(0)
    kx, kwih, kwhh, kbih, kbhh, kmask = jax.random.split(key, 6)

    x = jax.random.normal(kx, (B, E), dtype=jnp.float32)

    # PyTorch LSTMCell init: U(-1/sqrt(H), 1/sqrt(H)), gate order (i, f, g, o).
    bound = 1.0 / jnp.sqrt(jnp.float32(H))
    weight_ih = jax.random.uniform(kwih, (4 * H, E), jnp.float32, -bound, bound)
    weight_hh = jax.random.uniform(kwhh, (4 * H, H), jnp.float32, -bound, bound)
    bias_ih = jax.random.uniform(kbih, (4 * H,), jnp.float32, -bound, bound)
    bias_hh = jax.random.uniform(kbhh, (4 * H,), jnp.float32, -bound, bound)

    # StatefulLSTM: hidden/cell are None on first call -> zeros.
    h0 = jnp.zeros((B, H), jnp.float32)
    c0 = jnp.zeros((B, H), jnp.float32)

    # LockedDropout: locked mask, scaled by 1/(1-p). For p=0 this is all ones.
    if train and dropout > 0.0:
        keep = jax.random.bernoulli(kmask, 1.0 - dropout, (B, H)).astype(jnp.float32)
        mask = keep / (1.0 - dropout)
    else:
        mask = jnp.ones((B, H), jnp.float32)

    params = pack_lstm_params(weight_ih, weight_hh, bias_ih, bias_hh)  # once, hoisted

    y, h_new, c_new = lstm_block_forward(x, h0, c0, params, mask)
    jax.block_until_ready(y)

    y_ref, h_ref, c_ref = reference_forward(
        x, h0, c0, weight_ih, weight_hh, bias_ih, bias_hh, mask)

    # bf16 MXU inputs -> loosened tolerance vs. the f32 reference.
    assert jnp.allclose(y, y_ref, atol=2e-2, rtol=2e-2)
    assert jnp.allclose(h_new, h_ref, atol=2e-2, rtol=2e-2)
    assert jnp.allclose(c_new, c_ref, atol=2e-2, rtol=2e-2)

    print("KERNEL_OK")
</pallas_src>

<mosaic_0001>
module attributes {stable_mosaic.version = 11 : i64} {
  func.func @_lstm_block_kernel(%arg0: i32, %arg1: i32, %arg2: memref<8x256xbf16, #tpu.memory_space<vmem>>, %arg3: memref<8x128xf32, #tpu.memory_space<vmem>>, %arg4: memref<256x512xbf16, #tpu.memory_space<vmem>>, %arg5: memref<1x512xf32, #tpu.memory_space<vmem>>, %arg6: memref<8x128xf32, #tpu.memory_space<vmem>>, %arg7: memref<8x128xf32, #tpu.memory_space<vmem>>, %arg8: memref<8x128xf32, #tpu.memory_space<vmem>>, %arg9: memref<8x128xf32, #tpu.memory_space<vmem>>, %arg10: memref<8x512xf32, #tpu.memory_space<vmem>>) attributes {dimension_semantics = [#tpu.dimension_semantics<parallel>, #tpu.dimension_semantics<arbitrary>], iteration_bounds = array<i64: 1, 1>, scalar_prefetch = 0 : i64, scratch_operands = 1 : i64, tpu.core_type = #tpu.core_type<tc>, window_params = [{transform_indices = @transform_0, window_bounds = array<i64: 8, 256>}, {transform_indices = @transform_1, window_bounds = array<i64: 8, 128>}, {transform_indices = @transform_2, window_bounds = array<i64: 256, 512>}, {pipeline_mode = #tpu.pipeline_mode<synchronous>, transform_indices = @transform_3, window_bounds = array<i64: 1, 512>}, {transform_indices = @transform_4, window_bounds = array<i64: 8, 128>}, {transform_indices = @transform_5, window_bounds = array<i64: 8, 128>}, {transform_indices = @transform_6, window_bounds = array<i64: 8, 128>}, {transform_indices = @transform_7, window_bounds = array<i64: 8, 128>}]} {
    %c0_i32 = arith.constant 0 : i32
    %0 = arith.cmpi eq, %arg1, %c0_i32 : i32
    %1 = arith.extui %0 : i1 to i32
    %c0_i32_0 = arith.constant 0 : i32
    %2 = arith.cmpi ne, %1, %c0_i32_0 : i32
    scf.if %2 {
      %cst_10 = arith.constant 0.000000e+00 : f32
      %12 = vector.broadcast %cst_10 : f32 to vector<8x512xf32>
      %c0_11 = arith.constant 0 : index
      %c0_12 = arith.constant 0 : index
      %13 = vector.load %arg10[%c0_11, %c0_12] : memref<8x512xf32, #tpu.memory_space<vmem>>, vector<8x512xf32>
      tpu.vector_store %arg10[%c0_11, %c0_12], %12 {strides = array<i32>} : memref<8x512xf32, #tpu.memory_space<vmem>>, vector<8x512xf32>,
    } else {
    }
    %c0 = arith.constant 0 : index
    %c0_1 = arith.constant 0 : index
    %3 = vector.load %arg10[%c0, %c0_1] : memref<8x512xf32, #tpu.memory_space<vmem>>, vector<8x512xf32>
    %c0_2 = arith.constant 0 : index
    %c0_3 = arith.constant 0 : index
    %4 = vector.load %arg2[%c0_2, %c0_3] : memref<8x256xbf16, #tpu.memory_space<vmem>>, vector<8x256xbf16>
    %c0_4 = arith.constant 0 : index
    %c0_5 = arith.constant 0 : index
    %5 = vector.load %arg4[%c0_4, %c0_5] : memref<256x512xbf16, #tpu.memory_space<vmem>>, vector<256x512xbf16>
    %cst = arith.constant dense<0.000000e+00> : vector<8x512xf32>
    %6 = tpu.matmul %4, %5, %cst {dimension_numbers = #tpu.dot_dimension_numbers<[1], [0], [0], [1], [0, 0, 1, 1], [], []>} : vector<8x256xbf16>, vector<256x512xbf16>, vector<8x512xf32> -> vector<8x512xf32>
    %7 = arith.addf %3, %6 : vector<8x512xf32>
    %c0_6 = arith.constant 0 : index
    %c0_7 = arith.constant 0 : index
    %8 = vector.load %arg10[%c0_6, %c0_7] : memref<8x512xf32, #tpu.memory_space<vmem>>, vector<8x512xf32>
    tpu.vector_store %arg10[%c0_6, %c0_7], %7 {strides = array<i32>} : memref<8x512xf32, #tpu.memory_space<vmem>>, vector<8x512xf32>,
    %c0_i32_8 = arith.constant 0 : i32
    %9 = arith.cmpi eq, %arg1, %c0_i32_8 : i32
    %10 = arith.extui %9 : i1 to i32
    %c0_i32_9 = arith.constant 0 : i32
    %11 = arith.cmpi ne, %10, %c0_i32_9 : i32
    scf.if %11 {
      %c0_10 = arith.constant 0 : index
      %c0_11 = arith.constant 0 : index
      %12 = vector.load %arg10[%c0_10, %c0_11] : memref<8x512xf32, #tpu.memory_space<vmem>>, vector<8x512xf32>
      %c0_12 = arith.constant 0 : index
      %c0_13 = arith.constant 0 : index
      %13 = vector.load %arg5[%c0_12, %c0_13] : memref<1x512xf32, #tpu.memory_space<vmem>>, vector<1x512xf32>
      %14 = vector.broadcast %13 : vector<1x512xf32> to vector<8x512xf32>
      %15 = arith.addf %12, %14 : vector<8x512xf32>
      %16 = vector.extract_strided_slice %15 {offsets = [0, 0], sizes = [8, 128], strides = [1, 1]} : vector<8x512xf32> to vector<8x128xf32>
      %cst_14 = arith.constant 0.000000e+00 : f32
      %17 = vector.broadcast %cst_14 : f32 to vector<8x128xf32>
      %18 = arith.subf %17, %16 : vector<8x128xf32>
      %19 = math.exp %18 : vector<8x128xf32>
      %cst_15 = arith.constant 1.000000e+00 : f32
      %20 = vector.broadcast %cst_15 : f32 to vector<8x128xf32>
      %21 = arith.addf %20, %19 : vector<8x128xf32>
      %22 = tpu.reciprocal %21 {approx = true} : vector<8x128xf32> -> vector<8x128xf32>
      %23 = vector.extract_strided_slice %15 {offsets = [0, 128], sizes = [8, 128], strides = [1, 1]} : vector<8x512xf32> to vector<8x128xf32>
      %cst_16 = arith.constant 0.000000e+00 : f32
      %24 = vector.broadcast %cst_16 : f32 to vector<8x128xf32>
      %25 = arith.subf %24, %23 : vector<8x128xf32>
      %26 = math.exp %25 : vector<8x128xf32>
      %cst_17 = arith.constant 1.000000e+00 : f32
      %27 = vector.broadcast %cst_17 : f32 to vector<8x128xf32>
      %28 = arith.addf %27, %26 : vector<8x128xf32>
      %29 = tpu.reciprocal %28 {approx = true} : vector<8x128xf32> -> vector<8x128xf32>
      %30 = vector.extract_strided_slice %15 {offsets = [0, 256], sizes = [8, 128], strides = [1, 1]} : vector<8x512xf32> to vector<8x128xf32>
      %31 = math.tanh %30 : vector<8x128xf32>
      %32 = vector.extract_strided_slice %15 {offsets = [0, 384], sizes = [8, 128], strides = [1, 1]} : vector<8x512xf32> to vector<8x128xf32>
      %cst_18 = arith.constant 0.000000e+00 : f32
      %33 = vector.broadcast %cst_18 : f32 to vector<8x128xf32>
      %34 = arith.subf %33, %32 : vector<8x128xf32>
      %35 = math.exp %34 : vector<8x128xf32>
      %cst_19 = arith.constant 1.000000e+00 : f32
      %36 = vector.broadcast %cst_19 : f32 to vector<8x128xf32>
      %37 = arith.addf %36, %35 : vector<8x128xf32>
      %38 = tpu.reciprocal %37 {approx = true} : vector<8x128xf32> -> vector<8x128xf32>
      %c0_20 = arith.constant 0 : index
      %c0_21 = arith.constant 0 : index
      %39 = vector.load %arg3[%c0_20, %c0_21] : memref<8x128xf32, #tpu.memory_space<vmem>>, vector<8x128xf32>
      %40 = arith.mulf %29, %39 : vector<8x128xf32>
      %41 = arith.mulf %22, %31 : vector<8x128xf32>
      %42 = arith.addf %40, %41 : vector<8x128xf32>
      %43 = math.tanh %42 : vector<8x128xf32>
      %44 = arith.mulf %38, %43 : vector<8x128xf32>
      %c0_22 = arith.constant 0 : index
      %c0_23 = arith.constant 0 : index
      %45 = vector.load %arg6[%c0_22, %c0_23] : memref<8x128xf32, #tpu.memory_space<vmem>>, vector<8x128xf32>
      %46 = arith.mulf %44, %45 : vector<8x128xf32>
      %c0_24 = arith.constant 0 : index
      %c0_25 = arith.constant 0 : index
      %47 = vector.load %arg7[%c0_24, %c0_25] : memref<8x128xf32, #tpu.memory_space<vmem>>, vector<8x128xf32>
      tpu.vector_store %arg7[%c0_24, %c0_25], %46 {strides = array<i32>} : memref<8x128xf32, #tpu.memory_space<vmem>>, vector<8x128xf32>,
      %c0_26 = arith.constant 0 : index
      %c0_27 = arith.constant 0 : index
      %48 = vector.load %arg8[%c0_26, %c0_27] : memref<8x128xf32, #tpu.memory_space<vmem>>, vector<8x128xf32>
      tpu.vector_store %arg8[%c0_26, %c0_27], %44 {strides = array<i32>} : memref<8x128xf32, #tpu.memory_space<vmem>>, vector<8x128xf32>,
      %c0_28 = arith.constant 0 : index
      %c0_29 = arith.constant 0 : index
      %49 = vector.load %arg9[%c0_28, %c0_29] : memref<8x128xf32, #tpu.memory_space<vmem>>, vector<8x128xf32>
      tpu.vector_store %arg9[%c0_28, %c0_29], %42 {strides = array<i32>} : memref<8x128xf32, #tpu.memory_space<vmem>>, vector<8x128xf32>,
    } else {
    }
    return
  }
  func.func @transform_0(%arg0: i32, %arg1: i32) -> (i32, i32) {
    %c0_i32 = arith.constant 0 : i32
    return %arg0, %arg1 : i32, i32
  }
  func.func @transform_1(%arg0: i32, %arg1: i32) -> (i32, i32) {
    %c0_i32 = arith.constant 0 : i32
    %c0_i32_0 = arith.constant 0 : i32
    return %arg0, %c0_i32 : i32, i32
  }
  func.func @transform_2(%arg0: i32, %arg1: i32) -> (i32, i32) {
    %c0_i32 = arith.constant 0 : i32
    %c0_i32_0 = arith.constant 0 : i32
    return %arg1, %c0_i32 : i32, i32
  }
  func.func @transform_3(%arg0: i32, %arg1: i32) -> (i32, i32) {
    %c0_i32 = arith.constant 0 : i32
    %c0_i32_0 = arith.constant 0 : i32
    %c0_i32_1 = arith.constant 0 : i32
    return %c0_i32, %c0_i32_0 : i32, i32
  }
  func.func @transform_4(%arg0: i32, %arg1: i32) -> (i32, i32) {
    %c0_i32 = arith.constant 0 : i32
    %c0_i32_0 = arith.constant 0 : i32
    return %arg0, %c0_i32 : i32, i32
  }
  func.func @transform_5(%arg0: i32, %arg1: i32) -> (i32, i32) {
    %c0_i32 = arith.constant 0 : i32
    %c0_i32_0 = arith.constant 0 : i32
    return %arg0, %c0_i32 : i32, i32
  }
  func.func @transform_6(%arg0: i32, %arg1: i32) -> (i32, i32) {
    %c0_i32 = arith.constant 0 : i32
    %c0_i32_0 = arith.constant 0 : i32
    return %arg0, %c0_i32 : i32, i32
  }
  func.func @transform_7(%arg0: i32, %arg1: i32) -> (i32, i32) {
    %c0_i32 = arith.constant 0 : i32
    %c0_i32_0 = arith.constant 0 : i32
    return %arg0, %c0_i32 : i32, i32
  }
}

</mosaic_0001>

<bundles_post_ra>
// kernel: tpu_custom_call.1
= control target key start
LH: loop header
LB: loop body
LE: loop exit
PB: predicated region body
PF: predicated region fallthrough
CT: control target
= control target key end

     0   :  { %13 = vsyncpa [#allocation4], 0  ;;  %s1343_s0 = inlined_call_operand.hbm [shape: bf16[8,256], index: 0, kind: input, shape index: {}]   ;;  %s1344_s1 = inlined_call_operand.hbm [shape: f32[8,128], index: 1, kind: input, shape index: {}]   ;;  %s1345_s2 = inlined_call_operand.hbm [shape: bf16[256,512], index: 2, kind: input, shape index: {}]   ;;  %s1346_s3 = inlined_call_operand.hbm [shape: f32[1,512], index: 3, kind: input, shape index: {}]   ;;  %s1347_s4 = inlined_call_operand.hbm [shape: f32[8,128], index: 4, kind: input, shape index: {}]   ;;  %s1348_s5 = inlined_call_operand.hbm [shape: f32[8,128], index: 5, kind: output, shape index: {0}]   ;;  %s1349_s6 = inlined_call_operand.hbm [shape: f32[8,128], index: 6, kind: output, shape index: {1}]   ;;  %s1350_s7 = inlined_call_operand.hbm [shape: f32[8,128], index: 7, kind: output, shape index: {2}]  }
   0x1   :  { %14 = vsyncpa [#allocation7], 0 }
   0x2   :  { %15 = vsyncpa [#allocation10], 0 }
   0x3   :  { %16 = vsyncpa [#allocation5], 0  ;;  %s34_s26 = sshll.u32 %s1344_s1, 4  ;;  %s35_s26 = int_to_ptr.hbm [resolvable:$true] %s34_s26 }
   0x4   :  { %17 = vsyncpa [#allocation14], 0  ;;  %s1257_s27 = smov [#allocation6]   ;;  %s58_s8 = sshll.u32 %s1346_s3, 4  ;;  %s59_s8 = int_to_ptr.hbm [resolvable:$true] %s58_s8 }
   0x5   :  { %s36_s28 = sshll.u32 %s1257_s27, 4  ;;  %s1258_s9 = smov [#allocation9]   ;;  %s37_s28 = int_to_ptr.vmem [resolvable:$true] %s36_s28 }
   0x6   :  { %39 = dma.hbm_to_vmem [thread:$0]  %s35_s26, 128, %s37_s28, [#allocation7]  }
   0x7   :  { %s60_s10 = sshll.u32 %s1258_s9, 4  ;;  %s23_s13 = sshll.u32 %s1343_s0, 4  ;;  %s61_s10 = int_to_ptr.vmem [resolvable:$true] %s60_s10  ;;  %s24_s13 = int_to_ptr.hbm [resolvable:$true] %s23_s13 }
   0x8   :  { %63 = dma.hbm_to_vmem [thread:$0]  %s59_s8, 64, %s61_s10, [#allocation10]  }
   0x9   :  { %s44_s15 = sshll.u32 %s1345_s2, 4  ;;  %s1259_s16 = smov [#allocation3]   ;;  %s45_s15 = int_to_ptr.hbm [resolvable:$true] %s44_s15 }
   0xa   :  { %s25_s17 = sshll.u32 %s1259_s16, 4  ;;  %s1260_s3 = smov [#allocation8]   ;;  %s26_s17 = int_to_ptr.vmem [resolvable:$true] %s25_s17 }
   0xb   :  { %28 = dma.hbm_to_vmem [thread:$0]  %s24_s13, 128, %s26_s17, [#allocation4]  }
   0xc   :  { %s46_s18 = sshll.u32 %s1260_s3, 4  ;;  %s1261_s19 = smov 256   ;;  %s47_s18 = int_to_ptr.vmem [resolvable:$true] %s46_s18 }
   0xd   :  { %s1262_s20 = smov 16   ;;  %s69_s22 = sshll.u32 %s1347_s4, 4  ;;  %s70_s22 = int_to_ptr.hbm [resolvable:$true] %s69_s22 }
   0xe   :  { %52 = dma.hbm_to_vmem [thread:$0]  %s45_s15, 8192, %s47_s18, [#allocation7], %s1261_s19, %s1261_s19, %s1262_s20  }
   0xf   :  { %s1263_s23 = smov [#allocation11]  }
  0x10   :  { %s71_s24 = sshll.u32 %s1263_s23, 4  ;;  %s72_s24 = int_to_ptr.vmem [resolvable:$true] %s71_s24 }
  0x11   :  { %74 = dma.hbm_to_vmem [thread:$0]  %s70_s22, 128, %s72_s24, [#allocation10]  }
  0x12   :  { %1247 = dma.done.wait [#allocation4], 128  }
  0x13   :  { %1248 = vsyncadd [#allocation4], 4294967168 }
  0x14   :  { %1249 = dma.done.wait [#allocation7], 8320  }
  0x15   :  { %1250 = vsyncadd [#allocation7], 4294958976 }
  0x16   :  { %1251 = dma.done.wait [#allocation10], 192  }
  0x17   :  { %1252 = vsyncadd [#allocation10], 4294967104  ;;  %v823_v0 = vld [vmem:[#allocation8 + $0xe0] sm:$0xf]  ;;  %v995_v1 = vld [vmem:[#allocation8 + $0xec] sm:$0xf0] }
  0x18   :  { %v951_v2 = vld [vmem:[#allocation8 + $0x1e0] sm:$0xf]  ;;  %v824_v3 = vor.u32 %v995_v1, %v823_v0  ;;  %v1027_v4 = vld [vmem:[#allocation8 + $0x1ec] sm:$0xf0]  ;;  %v993_v5 = vld [vmem:[#allocation8 + $0xe4] sm:$0xf] }
  0x19   :  { %v825_v6 = vld [vmem:[#allocation8 + $0xf0] sm:$0xf0]  ;;  %v952_v7 = vor.u32 %v1027_v4, %v951_v2  ;;  %v1025_v9 = vld [vmem:[#allocation8 + $0x1e4] sm:$0xf]  ;;  %v807_v11 = vld [vmem:[#allocation8 + $0xc0] sm:$0xf] }
  0x1a   :  { %v828_v8 = vor.u32 %v993_v5, %v825_v6  ;;  %v953_v10 = vld [vmem:[#allocation8 + $0x1f0] sm:$0xf0]  ;;  %499 = vmatpush.bf16.msra.mxu0 %v824_v3  ;;  %v991_v13 = vld [vmem:[#allocation8 + $0xcc] sm:$0xf0]  ;;  %v935_v14 = vld [vmem:[#allocation8 + $0x1c0] sm:$0xf] }
  0x1b   :  { %v956_v12 = vor.u32 %v1025_v9, %v953_v10  ;;  %v1023_v15 = vld [vmem:[#allocation8 + $0x1cc] sm:$0xf0]  ;;  %512 = vmatpush.bf16.msra.mxu1 %v952_v7  ;;  %v808_v16 = vor.u32 %v991_v13, %v807_v11  ;;  %v989_v18 = vld [vmem:[#allocation8 + $0xc4] sm:$0xf]  ;;  %v809_v19 = vld [vmem:[#allocation8 + $0xd0] sm:$0xf0] }
  0x1c   :  { %525 = vmatpush.bf16.msra.mxu2 %v828_v8  ;;  %v936_v17 = vor.u32 %v1023_v15, %v935_v14  ;;  %v1021_v20 = vld [vmem:[#allocation8 + $0x1c4] sm:$0xf]  ;;  %v812_v21 = vor.u32 %v989_v18, %v809_v19  ;;  %v937_v22 = vld [vmem:[#allocation8 + $0x1d0] sm:$0xf0]  ;;  %v791_v23 = vld [vmem:[#allocation8 + $0xa0] sm:$0xf] }
  0x1d   :  { %538 = vmatpush.bf16.msra.mxu3 %v956_v12  ;;  %v987_v24 = vld [vmem:[#allocation8 + $0xac] sm:$0xf0]  ;;  %v940_v25 = vor.u32 %v1021_v20, %v937_v22  ;;  %v919_v26 = vld [vmem:[#allocation8 + $0x1a0] sm:$0xf]  ;;  %v985_v28 = vld [vmem:[#allocation8 + $0xa4] sm:$0xf] }
  0x1e   :  { %v1019_v27 = vld [vmem:[#allocation8 + $0x1ac] sm:$0xf0]  ;;  %500 = vmatpush.bf16.msra.mxu0 %v808_v16  ;;  %v792_v29 = vor.u32 %v987_v24, %v791_v23  ;;  %v793_v30 = vld [vmem:[#allocation8 + $0xb0] sm:$0xf0]  ;;  %v1017_v31 = vld [vmem:[#allocation8 + $0x1a4] sm:$0xf] }
  0x1f   :  { %v921_v32 = vld [vmem:[#allocation8 + $0x1b0] sm:$0xf0]  ;;  %513 = vmatpush.bf16.msra.mxu1 %v936_v17  ;;  %v920_v33 = vor.u32 %v1019_v27, %v919_v26  ;;  %v796_v34 = vor.u32 %v985_v28, %v793_v30  ;;  %v775_v35 = vld [vmem:[#allocation8 + $0x80] sm:$0xf]  ;;  %v983_v36 = vld [vmem:[#allocation8 + $0x8c] sm:$0xf0] }
  0x20   :  { %526 = vmatpush.bf16.msra.mxu2 %v812_v21  ;;  %v903_v37 = vld [vmem:[#allocation8 + $0x180] sm:$0xf]  ;;  %v924_v38 = vor.u32 %v1017_v31, %v921_v32  ;;  %v1015_v39 = vld [vmem:[#allocation8 + $0x18c] sm:$0xf0]  ;;  %v981_v40 = vld [vmem:[#allocation8 + $0x84] sm:$0xf]  ;;  %v776_v44 = vor.u32 %v983_v36, %v775_v35 }
  0x21   :  { %539 = vmatpush.bf16.msra.mxu3 %v940_v25  ;;  %v777_v41 = vld [vmem:[#allocation8 + $0x90] sm:$0xf0]  ;;  %v1013_v42 = vld [vmem:[#allocation8 + $0x184] sm:$0xf]  ;;  %v904_v45 = vor.u32 %v1015_v39, %v903_v37  ;;  %v759_v47 = vld [vmem:[#allocation8 + $0x60] sm:$0xf] }
  0x22   :  { %v905_v43 = vld [vmem:[#allocation8 + $0x190] sm:$0xf0]  ;;  %501 = vmatpush.bf16.msra.mxu0 %v792_v29  ;;  %v780_v46 = vor.u32 %v981_v40, %v777_v41  ;;  %v979_v48 = vld [vmem:[#allocation8 + $0x6c] sm:$0xf0]  ;;  %v887_v49 = vld [vmem:[#allocation8 + $0x160] sm:$0xf] }
  0x23   :  { %514 = vmatpush.bf16.msra.mxu1 %v920_v33  ;;  %v908_v50 = vor.u32 %v1013_v42, %v905_v43  ;;  %v1011_v51 = vld [vmem:[#allocation8 + $0x16c] sm:$0xf0]  ;;  %v977_v52 = vld [vmem:[#allocation8 + $0x64] sm:$0xf]  ;;  %v761_v53 = vld [vmem:[#allocation8 + $0x70] sm:$0xf0]  ;;  %v760_v56 = vor.u32 %v979_v48, %v759_v47 }
  0x24   :  { %527 = vmatpush.bf16.msra.mxu2 %v796_v34  ;;  %v1009_v54 = vld [vmem:[#allocation8 + $0x164] sm:$0xf]  ;;  %v889_v55 = vld [vmem:[#allocation8 + $0x170] sm:$0xf0]  ;;  %v888_v57 = vor.u32 %v1011_v51, %v887_v49  ;;  %v764_v58 = vor.u32 %v977_v52, %v761_v53  ;;  %v743_v59 = vld [vmem:[#allocation8 + $0x40] sm:$0xf] }
  0x25   :  { %540 = vmatpush.bf16.msra.mxu3 %v924_v38  ;;  %v975_v60 = vld [vmem:[#allocation8 + $0x4c] sm:$0xf0]  ;;  %v871_v61 = vld [vmem:[#allocation8 + $0x140] sm:$0xf]  ;;  %v892_v62 = vor.u32 %v1009_v54, %v889_v55  ;;  %v973_v0 = vld [vmem:[#allocation8 + $0x44] sm:$0xf] }
  0x26   :  { %502 = vmatpush.bf16.msra.mxu0 %v776_v44  ;;  %v1007_v63 = vld [vmem:[#allocation8 + $0x14c] sm:$0xf0]  ;;  %v745_v1 = vld [vmem:[#allocation8 + $0x50] sm:$0xf0]  ;;  %v1005_v2 = vld [vmem:[#allocation8 + $0x144] sm:$0xf]  ;;  %v744_v4 = vor.u32 %v975_v60, %v743_v59 }
  0x27   :  { %515 = vmatpush.bf16.msra.mxu1 %v904_v45  ;;  %v873_v3 = vld [vmem:[#allocation8 + $0x150] sm:$0xf0]  ;;  %v872_v5 = vor.u32 %v1007_v63, %v871_v61  ;;  %v748_v6 = vor.u32 %v973_v0, %v745_v1  ;;  %v727_v7 = vld [vmem:[#allocation8 + $0x20] sm:$0xf]  ;;  %v971_v8 = vld [vmem:[#allocation8 + $0x2c] sm:$0xf0] }
  0x28   :  { %528 = vmatpush.bf16.msra.mxu2 %v780_v46  ;;  %v855_v9 = vld [vmem:[#allocation8 + $0x120] sm:$0xf]  ;;  %v876_v10 = vor.u32 %v1005_v2, %v873_v3  ;;  %v1003_v11 = vld [vmem:[#allocation8 + $0x12c] sm:$0xf0]  ;;  %v969_v12 = vld [vmem:[#allocation8 + $0x24] sm:$0xf]  ;;  %v728_v16 = vor.u32 %v971_v8, %v727_v7 }
  0x29   :  { %541 = vmatpush.bf16.msra.mxu3 %v908_v50  ;;  %v729_v13 = vld [vmem:[#allocation8 + $0x30] sm:$0xf0]  ;;  %v1001_v14 = vld [vmem:[#allocation8 + $0x124] sm:$0xf]  ;;  %v711_v17 = vld [vmem:[#allocation8] sm:$0xf]  ;;  %v856_v20 = vor.u32 %v1003_v11, %v855_v9 }
  0x2a   :  { %503 = vmatpush.bf16.msra.mxu0 %v760_v56  ;;  %v857_v15 = vld [vmem:[#allocation8 + $0x130] sm:$0xf0]  ;;  %v967_v18 = vld [vmem:[#allocation8 + $0xc] sm:$0xf0]  ;;  %v839_v19 = vld [vmem:[#allocation8 + $0x100] sm:$0xf]  ;;  %v732_v21 = vor.u32 %v969_v12, %v729_v13 }
  0x2b   :  { %516 = vmatpush.bf16.msra.mxu1 %v888_v57  ;;  %v999_v22 = vld [vmem:[#allocation8 + $0x10c] sm:$0xf0]  ;;  %v965_v23 = vld [vmem:[#allocation8 + $0x4] sm:$0xf]  ;;  %v713_v24 = vld [vmem:[#allocation8 + $0x10] sm:$0xf0]  ;;  %v860_v25 = vor.u32 %v1001_v14, %v857_v15  ;;  %v712_v32 = vor.u32 %v967_v18, %v711_v17 }
  0x2c   :  { %529 = vmatpush.bf16.msra.mxu2 %v764_v58  ;;  %v997_v26 = vld [vmem:[#allocation8 + $0x104] sm:$0xf]  ;;  %v841_v27 = vld [vmem:[#allocation8 + $0x110] sm:$0xf0]  ;;  %v831_v28 = vld [vmem:[#allocation8 + $0xe8] sm:$0xf]  ;;  %v840_v37 = vor.u32 %v999_v22, %v839_v19  ;;  %v716_v38 = vor.u32 %v965_v23, %v713_v24 }
  0x2d   :  { %542 = vmatpush.bf16.msra.mxu3 %v892_v62  ;;  %v996_v29 = vld [vmem:[#allocation8 + $0xf4] sm:$0xf0]  ;;  %v959_v30 = vld [vmem:[#allocation8 + $0x1e8] sm:$0xf]  ;;  %v107_v31 = vld [vmem:[#allocation3] sm:$0xff]  ;;  %v844_v42 = vor.u32 %v997_v26, %v841_v27  ;;  %s1264_s2 = smov [#allocation13]  }
  0x2e   :  { %504 = vmatpush.bf16.msra.mxu0 %v744_v4  ;;  %v1028_v33 = vld [vmem:[#allocation8 + $0x1f4] sm:$0xf0]  ;;  %v994_v34 = vld [vmem:[#allocation8 + $0xec] sm:$0xf]  ;;  %v833_v35 = vld [vmem:[#allocation8 + $0xf8] sm:$0xf0]  ;;  %v173_v36 = vunpack.c.l.b16 %v107_v31  ;;  %v174_v41 = vunpack.c.h.b16 %v107_v31  ;;  %v832_v43 = vor.u32 %v996_v29, %v831_v28 }
  0x2f   :  { %517 = vmatpush.bf16.msra.mxu1 %v872_v5  ;;  %v1026_v39 = vld [vmem:[#allocation8 + $0x1ec] sm:$0xf]  ;;  %v961_v40 = vld [vmem:[#allocation8 + $0x1f8] sm:$0xf0]  ;;  %v960_v44 = vor.u32 %v1028_v33, %v959_v30  ;;  %v836_v45 = vor.u32 %v994_v34, %v833_v35  ;;  %v815_v46 = vld [vmem:[#allocation8 + $0xc8] sm:$0xf] }
  0x30   :  { %530 = vmatpush.bf16.msra.mxu2 %v748_v6  ;;  %v992_v47 = vld [vmem:[#allocation8 + $0xd4] sm:$0xf0]  ;;  %v943_v48 = vld [vmem:[#allocation8 + $0x1c8] sm:$0xf]  ;;  %v964_v49 = vor.u32 %v1026_v39, %v961_v40  ;;  %v990_v51 = vld [vmem:[#allocation8 + $0xcc] sm:$0xf]  ;;  %v1322_v53 = vpack.c.b16 %v173_v36, %v173_v36  ;;  %v1324_v56 = vpack.c.b16 %v174_v41, %v174_v41 }
  0x31   :  { %543 = vmatpush.bf16.msra.mxu3 %v876_v10  ;;  %v1024_v50 = vld [vmem:[#allocation8 + $0x1d4] sm:$0xf0]  ;;  %v817_v52 = vld [vmem:[#allocation8 + $0xd8] sm:$0xf0]  ;;  %v1022_v54 = vld [vmem:[#allocation8 + $0x1cc] sm:$0xf]  ;;  %v816_v57 = vor.u32 %v992_v47, %v815_v46 }
  0x32   :  { %505 = vmatpush.bf16.msra.mxu0 %v728_v16  ;;  %v945_v55 = vld [vmem:[#allocation8 + $0x1d8] sm:$0xf0]  ;;  %v944_v58 = vor.u32 %v1024_v50, %v943_v48  ;;  %v820_v59 = vor.u32 %v990_v51, %v817_v52  ;;  %v799_v60 = vld [vmem:[#allocation8 + $0xa8] sm:$0xf]  ;;  %v988_v61 = vld [vmem:[#allocation8 + $0xb4] sm:$0xf0] }
  0x33   :  { %518 = vmatpush.bf16.msra.mxu1 %v856_v20  ;;  %v927_v62 = vld [vmem:[#allocation8 + $0x1a8] sm:$0xf]  ;;  %v948_v63 = vor.u32 %v1022_v54, %v945_v55  ;;  %v1020_v0 = vld [vmem:[#allocation8 + $0x1b4] sm:$0xf0]  ;;  %v986_v1 = vld [vmem:[#allocation8 + $0xac] sm:$0xf]  ;;  %v800_v5 = vor.u32 %v988_v61, %v799_v60 }
  0x34   :  { %531 = vmatpush.bf16.msra.mxu2 %v732_v21  ;;  %v801_v2 = vld [vmem:[#allocation8 + $0xb8] sm:$0xf0]  ;;  %v1018_v3 = vld [vmem:[#allocation8 + $0x1ac] sm:$0xf]  ;;  %v928_v6 = vor.u32 %v1020_v0, %v927_v62  ;;  %v783_v8 = vld [vmem:[#allocation8 + $0x88] sm:$0xf] }
  0x35   :  { %544 = vmatpush.bf16.msra.mxu3 %v860_v25  ;;  %v929_v4 = vld [vmem:[#allocation8 + $0x1b8] sm:$0xf0]  ;;  %v804_v7 = vor.u32 %v986_v1, %v801_v2  ;;  %v984_v9 = vld [vmem:[#allocation8 + $0x94] sm:$0xf0]  ;;  %v911_v10 = vld [vmem:[#allocation8 + $0x188] sm:$0xf] }
  0x36   :  { %506 = vmatpush.bf16.msra.mxu0 %v712_v32  ;;  %v932_v11 = vor.u32 %v1018_v3, %v929_v4  ;;  %v1016_v12 = vld [vmem:[#allocation8 + $0x194] sm:$0xf0]  ;;  %v982_v13 = vld [vmem:[#allocation8 + $0x8c] sm:$0xf]  ;;  %v785_v14 = vld [vmem:[#allocation8 + $0x98] sm:$0xf0]  ;;  %v784_v17 = vor.u32 %v984_v9, %v783_v8 }
  0x37   :  { %519 = vmatpush.bf16.msra.mxu1 %v840_v37  ;;  %v1014_v15 = vld [vmem:[#allocation8 + $0x18c] sm:$0xf]  ;;  %v913_v16 = vld [vmem:[#allocation8 + $0x198] sm:$0xf0]  ;;  %v912_v18 = vor.u32 %v1016_v12, %v911_v10  ;;  %v788_v19 = vor.u32 %v982_v13, %v785_v14  ;;  %v767_v20 = vld [vmem:[#allocation8 + $0x68] sm:$0xf] }
  0x38   :  { %532 = vmatpush.bf16.msra.mxu2 %v716_v38  ;;  %v980_v21 = vld [vmem:[#allocation8 + $0x74] sm:$0xf0]  ;;  %v895_v22 = vld [vmem:[#allocation8 + $0x168] sm:$0xf]  ;;  %v916_v23 = vor.u32 %v1014_v15, %v913_v16  ;;  %v978_v25 = vld [vmem:[#allocation8 + $0x6c] sm:$0xf] }
  0x39   :  { %545 = vmatpush.bf16.msra.mxu3 %v844_v42  ;;  %507 = vmatmul.bf16.vlgmr.msra.gmra.mxu0 %v1322_v53  ;;  %v1012_v24 = vld [vmem:[#allocation8 + $0x174] sm:$0xf0]  ;;  %v769_v26 = vld [vmem:[#allocation8 + $0x78] sm:$0xf0]  ;;  %v1010_v27 = vld [vmem:[#allocation8 + $0x16c] sm:$0xf]  ;;  %v768_v29 = vor.u32 %v980_v21, %v767_v20 }
  0x3a   :  { %551 = vmatpush.bf16.msrb.mxu0 %v832_v43  ;;  %520 = vmatmul.bf16.vlgmr.msra.gmra.mxu1 %v1324_v56  ;;  %v897_v28 = vld [vmem:[#allocation8 + $0x178] sm:$0xf0]  ;;  %v896_v30 = vor.u32 %v1012_v24, %v895_v22  ;;  %v772_v31 = vor.u32 %v978_v25, %v769_v26  ;;  %v751_v32 = vld [vmem:[#allocation8 + $0x48] sm:$0xf]  ;;  %v976_v33 = vld [vmem:[#allocation8 + $0x54] sm:$0xf0] }
  0x3b   :  { %564 = vmatpush.bf16.msrb.mxu1 %v960_v44  ;;  %533 = vmatmul.bf16.vlgmr.msra.gmra.mxu2 %v1322_v53  ;;  %v879_v34 = vld [vmem:[#allocation8 + $0x148] sm:$0xf]  ;;  %v900_v35 = vor.u32 %v1010_v27, %v897_v28  ;;  %v1008_v36 = vld [vmem:[#allocation8 + $0x154] sm:$0xf0]  ;;  %v974_v37 = vld [vmem:[#allocation8 + $0x4c] sm:$0xf]  ;;  %v752_v41 = vor.u32 %v976_v33, %v751_v32 }
  0x3c   :  { %577 = vmatpush.bf16.msrb.mxu2 %v836_v45  ;;  %546 = vmatmul.bf16.vlgmr.msra.gmra.mxu3 %v1324_v56  ;;  %v753_v38 = vld [vmem:[#allocation8 + $0x58] sm:$0xf0]  ;;  %v1006_v39 = vld [vmem:[#allocation8 + $0x14c] sm:$0xf]  ;;  %v880_v42 = vor.u32 %v1008_v36, %v879_v34  ;;  %v735_v44 = vld [vmem:[#allocation8 + $0x28] sm:$0xf] }
  0x3d   :  { %590 = vmatpush.bf16.msrb.mxu3 %v964_v49  ;;  %v881_v40 = vld [vmem:[#allocation8 + $0x158] sm:$0xf0]  ;;  %v756_v43 = vor.u32 %v974_v37, %v753_v38  ;;  %v972_v45 = vld [vmem:[#allocation8 + $0x34] sm:$0xf0]  ;;  %v863_v46 = vld [vmem:[#allocation8 + $0x128] sm:$0xf] }
  0x3e   :  { %552 = vmatpush.bf16.msrb.mxu0 %v816_v57  ;;  %v884_v47 = vor.u32 %v1006_v39, %v881_v40  ;;  %v1004_v48 = vld [vmem:[#allocation8 + $0x134] sm:$0xf0]  ;;  %v970_v49 = vld [vmem:[#allocation8 + $0x2c] sm:$0xf]  ;;  %v737_v50 = vld [vmem:[#allocation8 + $0x38] sm:$0xf0]  ;;  %v736_v54 = vor.u32 %v972_v45, %v735_v44 }
  0x3f   :  { %565 = vmatpush.bf16.msrb.mxu1 %v944_v58  ;;  %v1002_v51 = vld [vmem:[#allocation8 + $0x12c] sm:$0xf]  ;;  %v865_v52 = vld [vmem:[#allocation8 + $0x138] sm:$0xf0]  ;;  %v864_v55 = vor.u32 %v1004_v48, %v863_v46  ;;  %v740_v57 = vor.u32 %v970_v49, %v737_v50  ;;  %v719_v58 = vld [vmem:[#allocation8 + $0x8] sm:$0xf] }
  0x40   :  { %578 = vmatpush.bf16.msrb.mxu2 %v820_v59  ;;  %v968_v59 = vld [vmem:[#allocation8 + $0x14] sm:$0xf0]  ;;  %v847_v60 = vld [vmem:[#allocation8 + $0x108] sm:$0xf]  ;;  %v868_v61 = vor.u32 %v1002_v51, %v865_v52  ;;  %v721_v0 = vld [vmem:[#allocation8 + $0x18] sm:$0xf0] }
  0x41   :  { %591 = vmatpush.bf16.msrb.mxu3 %v948_v63  ;;  %v1000_v62 = vld [vmem:[#allocation8 + $0x114] sm:$0xf0]  ;;  %v966_v63 = vld [vmem:[#allocation8 + $0xc] sm:$0xf]  ;;  %v849_v2 = vld [vmem:[#allocation8 + $0x118] sm:$0xf0]  ;;  %v720_v3 = vor.u32 %v968_v59, %v719_v58 }
  0x42   :  { %553 = vmatpush.bf16.msrb.mxu0 %v800_v5  ;;  %v998_v1 = vld [vmem:[#allocation8 + $0x10c] sm:$0xf]  ;;  %v848_v4 = vor.u32 %v1000_v62, %v847_v60  ;;  %v724_v5 = vor.u32 %v966_v63, %v721_v0  ;;  %v648_v36 = vld [vmem:[#allocation6] sm:$0xff]  ;;  %s675_s4 = sshll.u32 %s1264_s2, 4  ;;  %s677_s27 = sshll.u32 %s1349_s6, 4  ;;  %s676_s4 = int_to_ptr.vmem [resolvable:$true] %s675_s4  ;;  %s678_s27 = int_to_ptr.hbm [resolvable:$true] %s677_s27 }
  0x43   :  { %566 = vmatpush.bf16.msrb.mxu1 %v928_v6  ;;  %v852_v6 = vor.u32 %v998_v1, %v849_v2  ;;  %s1265_s28 = smov [#allocation15]   ;;  %s688_s9 = sshll.u32 %s1350_s7, 4  ;;  %s689_s9 = int_to_ptr.hbm [resolvable:$true] %s688_s9 }
  0x44   :  { %579 = vmatpush.bf16.msrb.mxu2 %v804_v7  ;;  %v618_v7 = vld [vmem:[#allocation9] sm:$0xf]  ;;  %s686_s29 = sshll.u32 %s1265_s28, 4  ;;  %s1266_s10 = smov [#allocation12]   ;;  %s687_s29 = int_to_ptr.vmem [resolvable:$true] %s686_s29 }
  0x45   :  { %592 = vmatpush.bf16.msrb.mxu3 %v932_v11  ;;  %v620_v11 = vperm.slane %v618_v7, 0  ;;  %v621_v13 = vperm.slane %v618_v7, 1  ;;  %v623_v34 = vperm.slane %v618_v7, 3  ;;  %s664_s11 = sshll.u32 %s1266_s10, 4  ;;  %s666_s1 = sshll.u32 %s1348_s5, 4  ;;  %s665_s11 = int_to_ptr.vmem [resolvable:$true] %s664_s11  ;;  %s667_s1 = int_to_ptr.hbm [resolvable:$true] %s666_s1 }
  0x46   :  { %554 = vmatpush.bf16.msrb.mxu0 %v784_v17 }
  0x47   :  { %567 = vmatpush.bf16.msrb.mxu1 %v912_v18 }
  0x48   :  { %580 = vmatpush.bf16.msrb.mxu2 %v788_v19 }
  0x49   :  { %593 = vmatpush.bf16.msrb.mxu3 %v916_v23 }
  0x4a   :  { %555 = vmatpush.bf16.msrb.mxu0 %v768_v29  ;;  %v622_v29 = vperm.slane %v618_v7, 2 }
  0x4b   :  { %568 = vmatpush.bf16.msrb.mxu1 %v896_v30 }
  0x4c   :  { %581 = vmatpush.bf16.msrb.mxu2 %v772_v31 }
  0x4d   :  { %594 = vmatpush.bf16.msrb.mxu3 %v900_v35 }
  0x4e   :  { %556 = vmatpush.bf16.msrb.mxu0 %v752_v41 }
  0x4f   :  { %569 = vmatpush.bf16.msrb.mxu1 %v880_v42 }
  0x50   :  { %582 = vmatpush.bf16.msrb.mxu2 %v756_v43 }
  0x51   :  { %595 = vmatpush.bf16.msrb.mxu3 %v884_v47 }
  0x52   :  { %557 = vmatpush.bf16.msrb.mxu0 %v736_v54 }
  0x53   :  { %570 = vmatpush.bf16.msrb.mxu1 %v864_v55 }
  0x54   :  { %583 = vmatpush.bf16.msrb.mxu2 %v740_v57  ;;  %v654_v57 = vld [vmem:[#allocation11] sm:$0xff] }
  0x55   :  { %596 = vmatpush.bf16.msrb.mxu3 %v868_v61 }
  0x56   :  { %558 = vmatpush.bf16.msrb.mxu0 %v720_v3 }
  0x57   :  { %571 = vmatpush.bf16.msrb.mxu1 %v848_v4 }
  0x58   :  { %584 = vmatpush.bf16.msrb.mxu2 %v724_v5 }
  0x59   :  { %597 = vmatpush.bf16.msrb.mxu3 %v852_v6  ;;  %559 = vmatmul.bf16.vlgmr.msrb.gmra.mxu0 %v1322_v53 }
  0x5a   :  { %572 = vmatmul.bf16.vlgmr.msrb.gmra.mxu1 %v1324_v56 }
  0x5b   :  { %585 = vmatmul.bf16.vlgmr.msrb.gmra.mxu2 %v1322_v53 }
  0x5c   :  { %598 = vmatmul.bf16.vlgmr.msrb.gmra.mxu3 %v1324_v56 }
  0xb6   :  { %v508_v8 = vpop.f32.mrf.mxu0 }
  0xb7   :  { %v521_v9 = vpop.f32.mrf.mxu1 }
  0xb8   :  { %v522_v10 = vadd.f32 %v521_v9, %v508_v8 }
  0xba   :  { %v628_v16 = vadd.f32 %v620_v11, %v522_v10 }
  0xbc   :  { %v632_v21 = vsub.f32 0.0, %v628_v16 }
  0xbe   :  { %v534_v12 = vpop.f32.mrf.mxu2  ;;  %v510_v17 = vpop.f32.mrf.mxu0  ;;  %v633_v24 = vmul.f32 1.442695, %v632_v21 }
  0xbf   :  { %v547_v14 = vpop.f32.mrf.mxu3  ;;  %v523_v19 = vpop.f32.mrf.mxu1 }
  0xc0   :  { %v548_v15 = vadd.f32 %v547_v14, %v534_v12 }
  0xc2   :  { %v629_v18 = vadd.f32 %v621_v13, %v548_v15 }
  0xc4   :  { %v637_v20 = vsub.f32 0.0, %v629_v18 }
  0xc6   :  { %v638_v22 = vmul.f32 1.442695, %v637_v20  ;;  %v536_v23 = vpop.f32.mrf.mxu2 }
  0xc7   :  { %v549_v53 = vpop.f32.mrf.mxu3 }
  0xc8   :  { %1039 = vpow2.f32 %v638_v22 }
  0xc9   :  { %1041 = vpow2.f32 %v633_v24 }
  0xce   :  { %v1040_v56 = vpop.eup %1039 }
  0xcf   :  { %v1042_v25 = vpop.eup %1041  ;;  %v640_v26 = vadd.f32 1.0, %v1040_v56 }
  0xd0   :  { %v635_v27 = vadd.f32 1.0, %v1042_v25 }
  0xd1   :  { %1043 = vrcp.f32 %v640_v26 }
  0xd2   :  { %1045 = vrcp.f32 %v635_v27 }
  0xd6   :  { %v560_v28 = vpop.f32.mrf.mxu0 }
  0xd7   :  { %v573_v30 = vpop.f32.mrf.mxu1  ;;  %v1044_v35 = vpop.eup %1043 }
  0xd8   :  { %v574_v31 = vadd.f32 %v573_v30, %v560_v28  ;;  %v1046_v41 = vpop.eup %1045  ;;  %v649_v42 = vmul.f32 %v1044_v35, %v648_v36 }
  0xda   :  { %v630_v32 = vadd.f32 %v622_v29, %v574_v31 }
  0xdc   :  { %1047 = vtanh.f32 %v630_v32 }
  0xde   :  { %v586_v33 = vpop.f32.mrf.mxu2  ;;  %v562_v38 = vpop.f32.mrf.mxu0 }
  0xdf   :  { %v599_v37 = vpop.f32.mrf.mxu3  ;;  %v575_v40 = vpop.f32.mrf.mxu1 }
  0xe0   :  { %v600_v39 = vadd.f32 %v599_v37, %v586_v33 }
  0xe2   :  { %v631_v43 = vadd.f32 %v623_v34, %v600_v39  ;;  %v1048_v44 = vpop.eup %1047 }
  0xe3   :  { %v650_v45 = vmul.f32 %v1048_v44, %v1046_v41 }
  0xe4   :  { %v643_v46 = vsub.f32 0.0, %v631_v43 }
  0xe5   :  { %v651_v47 = vadd.f32 %v650_v45, %v649_v42 }
  0xe6   :  { %v644_v48 = vmul.f32 1.442695, %v643_v46  ;;  %v588_v49 = vpop.f32.mrf.mxu2 }
  0xe7   :  { %v601_v50 = vpop.f32.mrf.mxu3  ;;  %658 = vst [vmem:[#allocation15] sm:$0xff] %v651_v47 }
  0xe8   :  { %1049 = vpow2.f32 %v644_v48 }
  0xe9   :  { %1051 = vtanh.f32 %v651_v47 }
  0xee   :  { %v1050_v51 = vpop.eup %1049 }
  0xef   :  { %v646_v52 = vadd.f32 1.0, %v1050_v51  ;;  %v1052_v54 = vpop.eup %1051 }
  0xf1   :  { %1053 = vrcp.f32 %v646_v52 }
  0xf7   :  { %v1054_v55 = vpop.eup %1053 }
  0xf8   :  { %v653_v58 = vmul.f32 %v1054_v55, %v1052_v54 }
  0xfa   :  { %657 = vst [vmem:[#allocation13] sm:$0xff] %v653_v58  ;;  %v655_v59 = vmul.f32 %v654_v57, %v653_v58 }
  0xfb   :  { %680 = dma.vmem_to_hbm [thread:$0]  %s676_s4, 128, %s678_s27, [#allocation14]  }
  0xfc   :  { %656 = vst [vmem:[#allocation12] sm:$0xff] %v655_v59  ;;  %691 = dma.vmem_to_hbm [thread:$0]  %s687_s29, 128, %s689_s9, [#allocation14]  }
  0xfd   :  { %669 = dma.vmem_to_hbm [thread:$0]  %s665_s11, 128, %s667_s1, [#allocation5]  }
  0xfe   :  { %1253 = dma.done.wait [#allocation5], 128  }
  0xff   :  { %1254 = vsyncadd [#allocation5], 4294967168 }
 0x100   :  { %1255 = dma.done.wait [#allocation14], 256  }
 0x101   :  { %1256 = vsyncadd [#allocation14], 4294967040 }
 0x102   :  { %704 = vsyncpa [#allocation4], 1 }
 0x103   :  { %705 = vsyncpa [#allocation7], 1 }
 0x104   :  { %706 = vsyncpa [#allocation10], 1 }
 0x105   :  { %707 = vsyncpa [#allocation5], 1 }
 0x106   :  { %708 = vsyncpa [#allocation14], 1 }

</bundles_post_ra>
